<compile_context>
chip_gen: v5e
topology: v5e:2x2
jax: 0.10.0
libtpu: 0.0.40
codegen_flags: <defaults>
</compile_context>

<pallas_src>
import jax
import jax.numpy as jnp
from jax.experimental import pallas as pl
from jax.experimental.pallas import tpu as pltpu


def gcn_kernel(x_ref, a_ref, w_ref, b_ref, o_ref):
    # x_ref: (1, C, TtV)      one batch sample, one T tile, lane-dense
    # a_ref: (TtV, TtV)       block-diagonal I_Tt (kron) A_norm
    # w_ref: (O, C)           1x1 conv weight (squeezed)
    # b_ref: (O, 1)           conv bias
    # o_ref: (1, O, TtV)
    x = x_ref[...][0]                                   # (C, TtV)  squeeze lead-1 (no relayout)
    a = a_ref[...]                                      # (TtV, TtV)
    w = w_ref[...]                                      # (O, C)

    O, C = w.shape
    if O <= C:
        # channel-mix first (fewer rows feeding the wide aggregation matmul)
        z = jnp.dot(w, x, preferred_element_type=jnp.float32)      # (O, TtV)
        out = jnp.dot(z, a, preferred_element_type=jnp.float32)    # (O, TtV)
    else:
        # aggregate first (matches module's op order; cheaper when O > C)
        y = jnp.dot(x, a, preferred_element_type=jnp.float32)      # (C, TtV)
        out = jnp.dot(w, y, preferred_element_type=jnp.float32)    # (O, TtV)

    out = out + b_ref[...]                              # bias broadcast over T*V lanes
    o_ref[...] = out[None, :, :].astype(o_ref.dtype)    # lane-dense, unmasked store


def _pick_t_tile(T, V, max_lanes=1024):
    """Largest divisor Tt of T with (Tt*V) % 128 == 0 and Tt*V <= max_lanes.

    Falls back to the full T extent (always legal: block == full array dim).
    """
    best = None
    for tt in range(1, T + 1):
        if T % tt:
            continue
        if (tt * V) % 128:
            continue
        if tt * V > max_lanes:
            continue
        best = tt
    return best if best is not None else T


def graph_conv_layer(x, A, conv_w, conv_b):
    """x: (N, C, T, V) float32; A: (V, V); conv_w: (O, C, 1, 1); conv_b: (O,)."""
    N, C, T, V = x.shape
    O = conv_w.shape[0]

    # Parameter setup (mirrors __init__ + the A-normalization glue in forward).
    # NOTE: matches torch.pow(D, -0.5) exactly; a zero-degree vertex would give
    # inf just like the PyTorch module does (kept for semantic parity).
    A_self = A + jnp.eye(V, dtype=A.dtype)
    D = jnp.sum(A_self, axis=1)
    D_inv_sqrt = jnp.diag(jnp.power(D, -0.5))
    A_norm = (D_inv_sqrt @ A_self @ D_inv_sqrt).astype(jnp.float32)

    # Fold the per-timestep aggregation into one lane-dense matmul:
    #   (x_flat @ (I_Tt kron A_norm))[c, t*V + w] == sum_v x[c, t, v] A_norm[v, w]
    Tt = _pick_t_tile(T, V)
    num_t_tiles = T // Tt
    TtV = Tt * V
    A_blk = jnp.kron(jnp.eye(Tt, dtype=jnp.float32), A_norm)       # (TtV, TtV)
    # TODO(synk): for very large T*V where no 128-aligned divisor tile exists
    # (e.g. T=300, V=25), add masked partial T tiles instead of the full-T fallback.

    w2d = conv_w.reshape(O, C).astype(jnp.float32)
    b2d = conv_b.reshape(O, 1).astype(jnp.float32)

    # Contiguous view: no transpose / relayout on the host side.
    x_flat = x.reshape(N, C, T * V).astype(jnp.float32)

    out_flat = pl.pallas_call(
        gcn_kernel,
        out_shape=jax.ShapeDtypeStruct((N, O, T * V), jnp.float32),
        grid_spec=pltpu.PrefetchScalarGridSpec(
            num_scalar_prefetch=0,
            grid=(N, num_t_tiles),
            in_specs=[
                pl.BlockSpec((1, C, TtV), lambda n, t: (n, 0, t)),
                pl.BlockSpec((TtV, TtV), lambda n, t: (0, 0)),
                pl.BlockSpec((O, C), lambda n, t: (0, 0)),
                pl.BlockSpec((O, 1), lambda n, t: (0, 0)),
            ],
            out_specs=pl.BlockSpec((1, O, TtV), lambda n, t: (n, 0, t)),
        ),
        compiler_params=pltpu.CompilerParams(
            dimension_semantics=("parallel", "parallel"),
            vmem_limit_bytes=32 * 1024 * 1024,
        ),
    )(x_flat, A_blk, w2d, b2d)

    # Contiguous view back to the module's NCHW-style layout.
    return out_flat.reshape(N, O, T, V)


def reference(x, A, conv_w, conv_b):
    V = A.shape[0]
    A_self = A + jnp.eye(V, dtype=A.dtype)
    D = jnp.sum(A_self, axis=1)
    D_inv_sqrt = jnp.diag(jnp.power(D, -0.5))
    A_norm = D_inv_sqrt @ A_self @ D_inv_sqrt
    y = jnp.einsum('nctv,vw->nctw', x.astype(jnp.float32), A_norm)
    w2d = conv_w.reshape(conv_w.shape[0], conv_w.shape[1])
    out = jnp.einsum('nctw,oc->notw', y, w2d)
    return out + conv_b.reshape(1, -1, 1, 1)


if __name__ == "__main__":
    key = jax.random.PRNGKey(0)
    k1, k2, k3, k4 = jax.random.split(key, 4)

    N, C_in, C_out, T, V = 2, 4, 8, 16, 16

    x = jax.random.normal(k1, (N, C_in, T, V), dtype=jnp.float32)
    # symmetric non-negative adjacency (no self loops; module adds I)
    A_raw = jax.random.uniform(k2, (V, V), dtype=jnp.float32)
    A = (A_raw + A_raw.T) * 0.5 * (1.0 - jnp.eye(V, dtype=jnp.float32))

    # deterministic conv parameters (nn.Conv2d(in, out, kernel_size=1) shapes)
    conv_w = jax.random.normal(k3, (C_out, C_in, 1, 1), dtype=jnp.float32) * 0.1
    conv_b = jax.random.normal(k4, (C_out,), dtype=jnp.float32) * 0.1

    out = graph_conv_layer(x, A, conv_w, conv_b)
    out = jax.block_until_ready(out)

    ref = jax.block_until_ready(reference(x, A, conv_w, conv_b))
    assert out.shape == (N, C_out, T, V)
    assert jnp.allclose(out, ref, atol=1e-4, rtol=1e-4), "mismatch vs reference"

    print("KERNEL_OK")
</pallas_src>

<mosaic_0001>
module attributes {stable_mosaic.version = 11 : i64} {
  func.func @gcn_kernel(%arg0: i32, %arg1: i32, %arg2: memref<1x4x256xf32, #tpu.memory_space<vmem>>, %arg3: memref<256x256xf32, #tpu.memory_space<vmem>>, %arg4: memref<8x4xf32, #tpu.memory_space<vmem>>, %arg5: memref<8x1xf32, #tpu.memory_space<vmem>>, %arg6: memref<1x8x256xf32, #tpu.memory_space<vmem>>) attributes {dimension_semantics = [#tpu.dimension_semantics<parallel>, #tpu.dimension_semantics<parallel>], iteration_bounds = array<i64: 2, 1>, scalar_prefetch = 0 : i64, scratch_operands = 0 : i64, tpu.core_type = #tpu.core_type<tc>, window_params = [{transform_indices = @transform_0, window_bounds = array<i64: 1, 4, 256>}, {pipeline_mode = #tpu.pipeline_mode<synchronous>, transform_indices = @transform_1, window_bounds = array<i64: 256, 256>}, {pipeline_mode = #tpu.pipeline_mode<synchronous>, transform_indices = @transform_2, window_bounds = array<i64: 8, 4>}, {pipeline_mode = #tpu.pipeline_mode<synchronous>, transform_indices = @transform_3, window_bounds = array<i64: 8, 1>}, {transform_indices = @transform_4, window_bounds = array<i64: 1, 8, 256>}]} {
    %c0 = arith.constant 0 : index
    %c0_0 = arith.constant 0 : index
    %c0_1 = arith.constant 0 : index
    %0 = vector.load %arg2[%c0, %c0_0, %c0_1] : memref<1x4x256xf32, #tpu.memory_space<vmem>>, vector<1x4x256xf32>
    %1 = vector.shape_cast %0 : vector<1x4x256xf32> to vector<4x256xf32>
    %c0_2 = arith.constant 0 : index
    %c0_3 = arith.constant 0 : index
    %2 = vector.load %arg3[%c0_2, %c0_3] : memref<256x256xf32, #tpu.memory_space<vmem>>, vector<256x256xf32>
    %c0_4 = arith.constant 0 : index
    %c0_5 = arith.constant 0 : index
    %3 = vector.load %arg4[%c0_4, %c0_5] : memref<8x4xf32, #tpu.memory_space<vmem>>, vector<8x4xf32>
    %cst = arith.constant dense<0.000000e+00> : vector<4x256xf32>
    %4 = tpu.matmul %1, %2, %cst {dimension_numbers = #tpu.dot_dimension_numbers<[1], [0], [0], [1], [0, 0, 1, 1], [], []>} : vector<4x256xf32>, vector<256x256xf32>, vector<4x256xf32> -> vector<4x256xf32>
    %cst_6 = arith.constant dense<0.000000e+00> : vector<8x256xf32>
    %5 = tpu.matmul %3, %4, %cst_6 {dimension_numbers = #tpu.dot_dimension_numbers<[1], [0], [0], [1], [0, 0, 1, 1], [], []>} : vector<8x4xf32>, vector<4x256xf32>, vector<8x256xf32> -> vector<8x256xf32>
    %c0_7 = arith.constant 0 : index
    %c0_8 = arith.constant 0 : index
    %6 = vector.load %arg5[%c0_7, %c0_8] : memref<8x1xf32, #tpu.memory_space<vmem>>, vector<8x1xf32>
    %7 = vector.broadcast %6 : vector<8x1xf32> to vector<8x256xf32>
    %8 = arith.addf %5, %7 : vector<8x256xf32>
    %9 = vector.shape_cast %8 : vector<8x256xf32> to vector<1x8x256xf32>
    %c0_9 = arith.constant 0 : index
    %c0_10 = arith.constant 0 : index
    %c0_11 = arith.constant 0 : index
    %10 = vector.load %arg6[%c0_9, %c0_10, %c0_11] : memref<1x8x256xf32, #tpu.memory_space<vmem>>, vector<1x8x256xf32>
    tpu.vector_store %arg6[%c0_9, %c0_10, %c0_11], %9 {strides = array<i32>} : memref<1x8x256xf32, #tpu.memory_space<vmem>>, vector<1x8x256xf32>,
    return
  }
  func.func @transform_0(%arg0: i32, %arg1: i32) -> (i32, i32, i32) {
    %c0_i32 = arith.constant 0 : i32
    %c0_i32_0 = arith.constant 0 : i32
    return %arg0, %c0_i32, %arg1 : i32, i32, i32
  }
  func.func @transform_1(%arg0: i32, %arg1: i32) -> (i32, i32) {
    %c0_i32 = arith.constant 0 : i32
    %c0_i32_0 = arith.constant 0 : i32
    %c0_i32_1 = arith.constant 0 : i32
    return %c0_i32, %c0_i32_0 : i32, i32
  }
  func.func @transform_2(%arg0: i32, %arg1: i32) -> (i32, i32) {
    %c0_i32 = arith.constant 0 : i32
    %c0_i32_0 = arith.constant 0 : i32
    %c0_i32_1 = arith.constant 0 : i32
    return %c0_i32, %c0_i32_0 : i32, i32
  }
  func.func @transform_3(%arg0: i32, %arg1: i32) -> (i32, i32) {
    %c0_i32 = arith.constant 0 : i32
    %c0_i32_0 = arith.constant 0 : i32
    %c0_i32_1 = arith.constant 0 : i32
    return %c0_i32, %c0_i32_0 : i32, i32
  }
  func.func @transform_4(%arg0: i32, %arg1: i32) -> (i32, i32, i32) {
    %c0_i32 = arith.constant 0 : i32
    %c0_i32_0 = arith.constant 0 : i32
    return %arg0, %c0_i32, %arg1 : i32, i32, i32
  }
}

</mosaic_0001>

<bundles_post_ra>
// kernel: tpu_custom_call.1
= control target key start
LH: loop header
LB: loop body
LE: loop exit
PB: predicated region body
PF: predicated region fallthrough
CT: control target
= control target key end

     0   :  { %9 = vsyncpa [#allocation3], 0  ;;  %s907_s0 = inlined_call_operand.vmem [shape: f32[2,4,256], index: 0, kind: input, shape index: {}]   ;;  %s908_s1 = inlined_call_operand.hbm [shape: f32[256,256], index: 1, kind: input, shape index: {}]   ;;  %s909_s2 = inlined_call_operand.vmem [shape: f32[8,4], index: 2, kind: input, shape index: {}]   ;;  %s910_s3 = inlined_call_operand.vmem [shape: f32[8,1], index: 3, kind: input, shape index: {}]   ;;  %s911_s4 = inlined_call_operand.hbm [shape: f32[2,8,256], index: 4, kind: output, shape index: {}]  }
   0x1   :  { %10 = vsyncpa [#allocation4], 0 }
   0x2   :  { %12 = vsyncpa [#allocation4 + $0x1], 0  ;;  %s796_s15 = smov 0   ;;  %s798_s16 = smov 0  }
   0x3   :  { %s800_s17 = smov 0   ;;  %s802_s18 = smov 0  }
   0x4   :  { %s804_s19 = smov 0   ;;  %s806_s20 = smov 0  }
   0x5 LB: > { %s562_s21 = sadd.s32 4294967295, %s765_s20   ;;  %s563_s22 = sadd.s32 4294967294, %s765_s20   ;;  %s765_s20 = sphi %s806_s20, %s18_s20   ;;  %s761_s19 = sphi %s804_s19, %s918_s19   ;;  %s757_s18 = sphi %s802_s18, %s917_s18   ;;  %s753_s17 = sphi %s800_s17, %s916_s17   ;;  %s749_s16 = sphi %s798_s16, %s915_s16   ;;  %s745_s15 = sphi %s796_s15, %s914_s15  }
   0x6   : > { %s30_s23 = sadd.s32 1, %s761_s19  ;;  %s130_s24 = sadd.s32 1, %s753_s17 }
   0x7   : > { %p32_p0 = scmp.ge.s32.totalorder %s30_s23, 2  ;;  %p140_p1 = scmp.ne.s32.totalorder %s753_s17, %s749_s16 }
   0x8   : > { %p141_p2 = scmp.eq.s32.totalorder %s562_s21, 1  ;;  %p146_p3 = scmp.ne.s32.totalorder %s749_s16, %s745_s15 }
   0x9   : > { %s920_s23 = smov (%p32_p0, %s30_s23), 0  ;;  %p147_p5 = scmp.eq.s32.totalorder %s563_s22, 1 }
   0xa   : > { %p836_p4 = por %p141_p2, %p140_p1  ;;  %s125_s26 = ssub.s32 %s761_s19, %s920_s23 }
   0xb   : > { %p564_p6 = scmp.ge.s32.totalorder %s765_s20, 1  ;;  %p128_p7 = scmp.eq.s32.totalorder %s125_s26, 0 }
   0xc   : > { %p843_p8 = por %p147_p5, %p146_p3  ;;  %p154_p9 = scmp.lt.s32.totalorder %s765_s20, 3 }
   0xd   : > { %s849_s28 = scalar_select %p128_p7, %s753_s17, %s130_s24  }
   0xe   : > { %p155_p10 = pnand %p564_p6, %p154_p9  ;;  %p597_p11 = scmp.eq.s32.totalorder %s562_s21, 0 }
   0xf   : > { %s165_s5 = sshll.u32 %s908_s1, 4  ;;  %s767_s6 = smov [#allocation2]   ;;  %s166_s5 = int_to_ptr.hbm [resolvable:$true] %s165_s5 }
  0x10   : > { %p589_p12 = pneg %p155_p10  ;;  %s167_s7 = sshll.u32 %s767_s6, 4  ;;  %s168_s7 = int_to_ptr.vmem [resolvable:$true] %s167_s7 }
  0x11   : > { %s768_s8 = smov 256   ;;  %s769_s9 = smov 16  }
  0x12   : > { %p590_p13 = pnand %p597_p11, %p589_p12  ;;  %202 = sbr.rel (%p155_p10) target bundleno = 323 (0x143), region = 36 }
  0x14   : > { %592 = dma.hbm_to_vmem [thread:$0]  (!%p590_p13), %s166_s5, 8192, %s168_s7, [#allocation3], %s768_s8, %s768_s8, %s769_s9  }
  0x17   : > { %736 = dma.done.wait (%p597_p11), [#allocation3], 8192  }
  0x18   : > { %738 = vsyncadd (%p597_p11), [#allocation3], 4294959104  ;;  %v276_v0 = vld [vmem:[#allocation2 + $0xf8] sm:$0xff]  ;;  %v274_v2 = vld [vmem:[#allocation2 + $0xe8] sm:$0xff]  ;;  %p234_p0 = scmp.lt.s32.totalorder %s757_s18, 1  ;;  %vm406_vm0 = vcmask 1043456  }
  0x19   : > { %v308_v1 = vld [vmem:[#allocation2 + $0x1f8] sm:$0xff]  ;;  %356 = vmatpush.msra.mxu2 %v276_v0  ;;  %v306_v3 = vld [vmem:[#allocation2 + $0x1e8] sm:$0xff]  ;;  %v275_v6 = vld [vmem:[#allocation2 + $0xf0] sm:$0xff]  ;;  %vm402_vm1 = vcmask 31744   ;;  %s230_s29 = sand.u32 1, %s749_s16   ;;  %s582_s5 = sshll.u32 %s757_s18, 4 }
  0x1a   : > { %376 = vmatpush.msra.mxu3 %v308_v1  ;;  %v272_v4 = vld [vmem:[#allocation2 + $0xd8] sm:$0xff]  ;;  %v307_v7 = vld [vmem:[#allocation2 + $0x1f0] sm:$0xff]  ;;  %v273_v8 = vld [vmem:[#allocation2 + $0xe0] sm:$0xff]  ;;  %316 = vmatpush.msra.mxu0 %v275_v6  ;;  %s858_s10 = scalar_select %p234_p0, %s757_s18, 1 }
  0x1b   : > { %v304_v5 = vld [vmem:[#allocation2 + $0x1d8] sm:$0xff]  ;;  %357 = vmatpush.msra.mxu2 %v274_v2  ;;  %v305_v9 = vld [vmem:[#allocation2 + $0x1e0] sm:$0xff]  ;;  %336 = vmatpush.msra.mxu1 %v307_v7  ;;  %v270_v10 = vld [vmem:[#allocation2 + $0xc8] sm:$0xff]  ;;  %s569_s30 = sshll.u32 %s230_s29, 4  ;;  %s469_s8 = scalar_lea.hbm %s911_s4, %s582_s5 }
  0x1c   : > { %377 = vmatpush.msra.mxu3 %v306_v3  ;;  %v302_v11 = vld [vmem:[#allocation2 + $0x1c8] sm:$0xff]  ;;  %v271_v12 = vld [vmem:[#allocation2 + $0xd0] sm:$0xff]  ;;  %317 = vmatpush.msra.mxu0 %v273_v8  ;;  %v268_v14 = vld [vmem:[#allocation2 + $0xb8] sm:$0xff]  ;;  %s581_s11 = sshll.u32 %s858_s10, 3  ;;  %s232_s9 = scalar_lea.vmem [#allocation5], %s569_s30 }
  0x1d   : > { %358 = vmatpush.msra.mxu2 %v272_v4  ;;  %v303_v13 = vld [vmem:[#allocation2 + $0x1d0] sm:$0xff]  ;;  %337 = vmatpush.msra.mxu1 %v305_v9  ;;  %v300_v15 = vld [vmem:[#allocation2 + $0x1b8] sm:$0xff]  ;;  %v269_v16 = vld [vmem:[#allocation2 + $0xc0] sm:$0xff]  ;;  %s241_s14 = scalar_lea.vmem %s907_s0, %s581_s11  ;;  %v770_v4 = vmov 0   ;;  %s471_s10 = sshll.u32 %s232_s9, 4  ;;  %s472_s10 = int_to_ptr.vmem [resolvable:$true] %s471_s10 }
  0x1e   : > { %378 = vmatpush.msra.mxu3 %v304_v5  ;;  %v301_v17 = vld [vmem:[#allocation2 + $0x1c0] sm:$0xff]  ;;  %318 = vmatpush.msra.mxu0 %v271_v12  ;;  %v266_v18 = vld [vmem:[#allocation2 + $0xa8] sm:$0xff]  ;;  %v267_v20 = vld [vmem:[#allocation2 + $0xb0] sm:$0xff]  ;;  %s473_s11 = sshll.u32 %s469_s8, 4  ;;  %s456_s12 = scalar_lea.sflag [#allocation4], %s230_s29  ;;  %s474_s11 = int_to_ptr.hbm [resolvable:$true] %s473_s11 }
  0x1f   : > { %359 = vmatpush.msra.mxu2 %v270_v10  ;;  %338 = vmatpush.msra.mxu1 %v303_v13  ;;  %v298_v19 = vld [vmem:[#allocation2 + $0x1a8] sm:$0xff]  ;;  %v299_v21 = vld [vmem:[#allocation2 + $0x1b0] sm:$0xff]  ;;  %v264_v22 = vld [vmem:[#allocation2 + $0x98] sm:$0xff]  ;;  %s697_s13 = sshra.s32 %s474_s11, 4  ;;  %s703_s22 = scalar_lea.hbm %s911_s4, 32  ;;  %s698_s13 = int_to_ptr.hbm [resolvable:$true] %s697_s13 }
  0x20   : > { %379 = vmatpush.msra.mxu3 %v302_v11  ;;  %319 = vmatpush.msra.mxu0 %v269_v16  ;;  %v296_v23 = vld [vmem:[#allocation2 + $0x198] sm:$0xff]  ;;  %v265_v24 = vld [vmem:[#allocation2 + $0xa0] sm:$0xff]  ;;  %v262_v26 = vld [vmem:[#allocation2 + $0x88] sm:$0xff]  ;;  %s699_s18 = scalar_lea.hbm %s698_s13, 16  ;;  %p704_p5 = scmp.lt.s32.totalorder %s698_s13, %s911_s4 }
  0x21   : > { %360 = vmatpush.msra.mxu2 %v268_v14  ;;  %339 = vmatpush.msra.mxu1 %v301_v17  ;;  %v297_v25 = vld [vmem:[#allocation2 + $0x1a0] sm:$0xff]  ;;  %v294_v27 = vld [vmem:[#allocation2 + $0x188] sm:$0xff]  ;;  %v263_v28 = vld [vmem:[#allocation2 + $0x90] sm:$0xff]  ;;  %p700_p1 = scmp.ne.s32.totalorder %s698_s13, %s699_s18  ;;  %p705_p6 = scmp.lt.s32.totalorder %s703_s22, %s699_s18 }
  0x22   : > { %380 = vmatpush.msra.mxu3 %v300_v15  ;;  %320 = vmatpush.msra.mxu0 %v267_v20  ;;  %v295_v29 = vld [vmem:[#allocation2 + $0x190] sm:$0xff]  ;;  %v260_v30 = vld [vmem:[#allocation2 + $0x78] sm:$0xff]  ;;  %v261_v32 = vld [vmem:[#allocation2 + $0x80] sm:$0xff] }
  0x23   : > { %361 = vmatpush.msra.mxu2 %v266_v18  ;;  %340 = vmatpush.msra.mxu1 %v299_v21  ;;  %v292_v31 = vld [vmem:[#allocation2 + $0x178] sm:$0xff]  ;;  %v293_v33 = vld [vmem:[#allocation2 + $0x180] sm:$0xff]  ;;  %v258_v34 = vld [vmem:[#allocation2 + $0x68] sm:$0xff]  ;;  %p701_p2 = pnand %p700_p1, %p836_p4  ;;  %p706_p7 = por %p705_p6, %p704_p5 }
  0x24   : > { %381 = vmatpush.msra.mxu3 %v298_v19  ;;  %321 = vmatpush.msra.mxu0 %v265_v24  ;;  %v290_v35 = vld [vmem:[#allocation2 + $0x168] sm:$0xff]  ;;  %v259_v36 = vld [vmem:[#allocation2 + $0x70] sm:$0xff]  ;;  %v256_v38 = vld [vmem:[#allocation2 + $0x58] sm:$0xff] }
  0x25   : > { %362 = vmatpush.msra.mxu2 %v264_v22  ;;  %341 = vmatpush.msra.mxu1 %v297_v25  ;;  %v291_v37 = vld [vmem:[#allocation2 + $0x170] sm:$0xff]  ;;  %v288_v39 = vld [vmem:[#allocation2 + $0x158] sm:$0xff]  ;;  %v257_v40 = vld [vmem:[#allocation2 + $0x60] sm:$0xff]  ;;  %p702_p3 = pneg %p701_p2 }
  0x26   : > { %382 = vmatpush.msra.mxu3 %v296_v23  ;;  %322 = vmatpush.msra.mxu0 %v263_v28  ;;  %v289_v41 = vld [vmem:[#allocation2 + $0x160] sm:$0xff]  ;;  %v244_v42 = vld [vmem:[%s241_s14] sm:$0xff]  ;;  %v254_v43 = vld [vmem:[#allocation2 + $0x48] sm:$0xff] }
  0x27   : > { %363 = vmatpush.msra.mxu2 %v262_v26  ;;  %342 = vmatpush.msra.mxu1 %v295_v29  ;;  %v286_v44 = vld [vmem:[#allocation2 + $0x148] sm:$0xff]  ;;  %311 = vst [vmem:[#allocation1] ss:$2 sm:$0xff] %v244_v42  ;;  %v255_v45 = vld [vmem:[#allocation2 + $0x50] sm:$0xff]  ;;  %v252_v47 = vld [vmem:[#allocation2 + $0x38] sm:$0xff]  ;;  %p707_p9 = pnand %p706_p7, %p702_p3 }
  0x28   : > { %383 = vmatpush.msra.mxu3 %v294_v27  ;;  %323 = vmatpush.msra.mxu0 %v261_v32  ;;  %v287_v46 = vld [vmem:[#allocation2 + $0x150] sm:$0xff]  ;;  %v284_v48 = vld [vmem:[#allocation2 + $0x138] sm:$0xff]  ;;  %v253_v49 = vld [vmem:[#allocation2 + $0x40] sm:$0xff] }
  0x29   : > { %364 = vmatpush.msra.mxu2 %v260_v30  ;;  %343 = vmatpush.msra.mxu1 %v293_v33  ;;  %v285_v50 = vld [vmem:[#allocation2 + $0x140] sm:$0xff]  ;;  %v250_v51 = vld [vmem:[#allocation2 + $0x28] sm:$0xff]  ;;  %v251_v53 = vld [vmem:[#allocation2 + $0x30] sm:$0xff] }
  0x2a   : > { %384 = vmatpush.msra.mxu3 %v292_v31  ;;  %324 = vmatpush.msra.mxu0 %v259_v36  ;;  %v282_v52 = vld [vmem:[#allocation2 + $0x128] sm:$0xff]  ;;  %v283_v54 = vld [vmem:[#allocation2 + $0x130] sm:$0xff]  ;;  %v248_v55 = vld [vmem:[#allocation2 + $0x18] sm:$0xff] }
  0x2b   : > { %365 = vmatpush.msra.mxu2 %v258_v34  ;;  %344 = vmatpush.msra.mxu1 %v291_v37  ;;  %v280_v56 = vld [vmem:[#allocation2 + $0x118] sm:$0xff]  ;;  %v249_v57 = vld [vmem:[#allocation2 + $0x20] sm:$0xff]  ;;  %v246_v59 = vld [vmem:[#allocation2 + $0x8] sm:$0xff] }
  0x2c   : > { %385 = vmatpush.msra.mxu3 %v290_v35  ;;  %325 = vmatpush.msra.mxu0 %v257_v40  ;;  %v281_v58 = vld [vmem:[#allocation2 + $0x120] sm:$0xff]  ;;  %v278_v60 = vld [vmem:[#allocation2 + $0x108] sm:$0xff]  ;;  %v247_v63 = vld [vmem:[#allocation2 + $0x10] sm:$0xff] }
  0x2d   : > { %366 = vmatpush.msra.mxu2 %v256_v38  ;;  %345 = vmatpush.msra.mxu1 %v289_v41  ;;  %v279_v0 = vld [vmem:[#allocation2 + $0x110] sm:$0xff]  ;;  %v245_v1 = vld [vmem:[#allocation2] sm:$0xff]  ;;  %v396_v3 = vld [vmem:[%s910_s3] sm:$0xff] }
  0x2e   : > { %386 = vmatpush.msra.mxu3 %v288_v39  ;;  %326 = vmatpush.msra.mxu0 %v255_v45  ;;  %v312_v61 = vld.sshfl [vmem:[#allocation1] sm:$0xff pattern:$0x75316420]  ;;  %v313_v62 = vld.sshfl [vmem:[#allocation1 + $0x8] sm:$0xff pattern:$0x75316420] }
  0x2f   : > { %367 = vmatpush.msra.mxu2 %v254_v43  ;;  %346 = vmatpush.msra.mxu1 %v287_v46  ;;  %v277_v2 = vld [vmem:[#allocation2 + $0x100] sm:$0xff]  ;;  %v309_v8 = vld [vmem:[%s909_s2] sm:$0xff] }
  0x30   : > { %387 = vmatpush.msra.mxu3 %v286_v44  ;;  %327 = vmatpush.msra.mxu0 %v253_v49 }
  0x31   : > { %368 = vmatpush.msra.mxu2 %v252_v47  ;;  %347 = vmatpush.msra.mxu1 %v285_v50 }
  0x32   : > { %388 = vmatpush.msra.mxu3 %v284_v48  ;;  %328 = vmatpush.msra.mxu0 %v251_v53 }
  0x33   : > { %369 = vmatpush.msra.mxu2 %v250_v51  ;;  %348 = vmatpush.msra.mxu1 %v283_v54 }
  0x34   : > { %389 = vmatpush.msra.mxu3 %v282_v52  ;;  %329 = vmatpush.msra.mxu0 %v249_v57 }
  0x35   : > { %370 = vmatpush.msra.mxu2 %v248_v55  ;;  %349 = vmatpush.msra.mxu1 %v281_v58 }
  0x36   : > { %390 = vmatpush.msra.mxu3 %v280_v56  ;;  %330 = vmatpush.msra.mxu0 %v247_v63 }
  0x37   : > { %371 = vmatpush.msra.mxu2 %v246_v59  ;;  %350 = vmatpush.msra.mxu1 %v279_v0 }
  0x38   : > { %391 = vmatpush.msra.mxu3 %v278_v60  ;;  %372 = vmatmul.f32.vlgmr.msra.gmra.mxu2 %v312_v61 }
  0x39   : > { %392 = vmatmul.f32.vlgmr.msra.gmra.mxu3 %v313_v62  ;;  %331 = vmatpush.msra.mxu0 %v245_v1 }
  0x3a   : > { %351 = vmatpush.msra.mxu1 %v277_v2  ;;  %332 = vmatmul.f32.vlgmr.msra.gmra.mxu0 %v312_v61 }
  0x3b   : > { %352 = vmatmul.f32.vlgmr.msra.gmra.mxu1 %v313_v62  ;;  %652 = vset.pattern.permute.xlu0 %v770_v4 }
  0x3c   : > { %399 = vperm.xlu0 %652, %v396_v3  }
  0xae   : > { %v400_v12 = vpop.permute.xlu0 %399 }
  0xb7   : > { %v333_v5 = vpop.f32.mrf.mxu0 }
  0xb8   : > { %v353_v6 = vpop.f32.mrf.mxu1 }
  0xb9   : > { %v354_v7 = vadd.f32 %v353_v6, %v333_v5 }
  0xbb   : > { %v373_v9 = vpop.f32.mrf.mxu2  ;;  %572 = vmatpush.msk.msrb.mxu0 %vm406_vm0, %v354_v7 }
  0xbc   : > { %v393_v10 = vpop.f32.mrf.mxu3  ;;  %573 = vmatmul.msk.f32.vlgmr.msrb.gmra.mxu0 %vm402_vm1, %v309_v8 }
  0xbd   : > { %v394_v11 = vadd.f32 %v393_v10, %v373_v9 }
  0xbf   : > { %574 = vmatpush.msk.msrb.mxu1 %vm406_vm0, %v394_v11 }
  0xc0   : > { %575 = vmatmul.msk.f32.vlgmr.msrb.gmra.mxu1 %vm402_vm1, %v309_v8 }
 0x139   : > { %v430_v13 = vpop.f32.mrf.mxu0 }
 0x13a   : > { %v431_v14 = vadd.f32 %v430_v13, %v400_v12 }
 0x13c   : > { %453 = vst [vmem:[%s232_s9] sm:$0xff] %v431_v14 }
 0x13d   : > { %v450_v15 = vpop.f32.mrf.mxu1 }
 0x13e   : > { %v451_v16 = vadd.f32 %v450_v15, %v400_v12 }
 0x140   : > { %454 = vst [vmem:[%s232_s9 + $0x8] sm:$0xff] %v451_v16 }
 0x141   : > { %710 = shalt.err (!%p707_p9)
}
 0x142   : > { %587 = dma.vmem_to_hbm [thread:$0]  (%p836_p4), %s472_s10, 256, %s474_s11, %s456_s12  }
 0x143 PF: > { %p599_p10 = scmp.ge.s32.totalorder %s765_s20, 2  ;;  %s485_s29 = sand.u32 1, %s745_s15  }
 0x144   : > { %s486_s30 = scalar_lea.sflag [#allocation4], %s485_s29 }
 0x145   : > { %p594_p11 = pnand %p599_p10, %p843_p8 }
 0x147   : > { %p595_p12 = pneg %p594_p11 }
 0x149   : > { %740 = dma.done.wait (%p595_p12), %s486_s30, 256  }
 0x14a   : > { %742 = vsyncadd (%p595_p12), %s486_s30, 4294967040  ;;  %s18_s20 = sadd.s32 1, %s765_s20   ;;  %s914_s15 = smov %s749_s16 }
 0x14b   : > { %p15_p13 = scmp.ge.s32.totalorder %s18_s20, 4   ;;  %s915_s16 = smov %s753_s17 }
 0x14c   : > { %s916_s17 = smov %s849_s28  ;;  %s917_s18 = smov %s761_s19 }
 0x14d   : > { %s918_s19 = smov %s920_s23  ;;  %17 = sbr.rel (!%p15_p13) target bundleno = 5 (0x5), region = 76 }
 0x152   :  { %492 = vsyncpa [#allocation3], 1 }
 0x153   :  { %494 = vsyncpa [#allocation3 + $0x1], 1 }
 0x154   :  { %495 = vsyncpa [#allocation4], 1 }
 0x155   :  { %497 = vsyncpa [#allocation4 + $0x1], 1 }

</bundles_post_ra>
